<compile_context>
chip_gen: v7x
topology: tpu7x:2x2x1
jax: 0.10.0
libtpu: 0.0.40
codegen_flags: <defaults>
</compile_context>

<pallas_src>
import functools

import jax
import jax.numpy as jnp
from jax.experimental import pallas as pl
from jax.experimental.pallas import tpu as pltpu

NSW = "10+5+10"
OUT = int(NSW[:2])      # 10
HIDDEN = 512
IN_CH = 2
N_CLS = 5
SLAB_ROWS = N_CLS * IN_CH + N_CLS + 1   # 16: w1 rows + b1 rows + b2 row


def _hardswish(x):
    # nn.Hardswish: x * relu6(x + 3) / 6
    return x * jnp.clip(x + 3.0, 0.0, 6.0) * (1.0 / 6.0)


def _splitfc_kernel(x_ref, slab_ref, w2t_ref, o_ref, *, batch):
    # x_ref:    (B, 10)        input at spatial (0,0); channels [2g, 2g+1] -> classifier g
    # slab_ref: (16, 512)      rows 0..9 = w1 (row 2g+c), rows 10..14 = b1[g],
    #                          row 15 lanes 0..49 = b2 (zero-padded to 512 lanes)
    # w2t_ref:  (512, 50)      pre-transposed layer-2 weights, col g*10+j = classifier g output j
    # o_ref:    (5B, 10)       rows grouped classifier-major (== torch.cat over classifiers)
    x = x_ref[...]
    slab = slab_ref[...]

    # ---- layer 1: VPU broadcast-FMAs (K=2 contraction; keep it off the MXU) ----
    h_blocks = []
    for g in range(N_CLS):
        xa = x[:, 2 * g:2 * g + 1]                 # (B, 1)
        xb = x[:, 2 * g + 1:2 * g + 2]             # (B, 1)
        wa = slab[2 * g:2 * g + 1, :]              # (1, 512)
        wb = slab[2 * g + 1:2 * g + 2, :]          # (1, 512)
        bg = slab[N_CLS * IN_CH + g:N_CLS * IN_CH + g + 1, :]   # (1, 512)
        h_blocks.append(xa * wa + xb * wb + bg)    # (B, 512)
    h = jnp.concatenate(h_blocks, axis=0)          # (5B, 512), classifier-major rows
    h = _hardswish(h)

    # ---- layer 2: ONE fused MXU matmul over all 5 classifiers -------------------
    # (5B, 512) @ (512, 50): contraction dim is on RHS sublanes (MXU-native layout).
    y = jnp.dot(h, w2t_ref[...], preferred_element_type=jnp.float32)   # (5B, 50)
    y = y + slab[SLAB_ROWS - 1:SLAB_ROWS, 0:N_CLS * OUT]               # (1, 50) bias

    # ---- block-diagonal extraction: O[g*B+b, j] = Y[g*B+b, g*10+j] --------------
    # torch.clamp(torch.round(y * 4) / 4, -32, 31.75); jnp.round matches torch
    # round-half-to-even semantics.
    for g in range(N_CLS):
        yg = y[g * batch:(g + 1) * batch, g * OUT:(g + 1) * OUT]       # (B, 10)
        og = jnp.clip(jnp.round(yg * 4.0) * 0.25, -32.0, 31.75)
        o_ref[g * batch:(g + 1) * batch, :] = og.astype(o_ref.dtype)


def init_raw_params(key):
    """Deterministic synthetic init mirroring PyTorch 1x1-conv fan-in bounds.

    Raw ("torch-like") layouts:
      w1: (N_CLS*IN_CH, HIDDEN)   row 2g+c   = classifier g, input channel c
      b1: (N_CLS, HIDDEN)
      w2: (N_CLS*OUT, HIDDEN)     row g*OUT+j = classifier g, output channel j
      b2: (1, N_CLS*OUT)
    """
    k1, k2, k3, k4 = jax.random.split(key, 4)
    bound1 = 1.0 / jnp.sqrt(float(IN_CH))     # fan_in = 2*1*1
    bound2 = 1.0 / jnp.sqrt(float(HIDDEN))    # fan_in = 512*1*1
    w1 = jax.random.uniform(k1, (N_CLS * IN_CH, HIDDEN), jnp.float32, -bound1, bound1)
    b1 = jax.random.uniform(k2, (N_CLS, HIDDEN), jnp.float32, -bound1, bound1)
    w2 = jax.random.uniform(k3, (N_CLS * OUT, HIDDEN), jnp.float32, -bound2, bound2)
    b2 = jax.random.uniform(k4, (1, N_CLS * OUT), jnp.float32, -bound2, bound2)
    return w1, b1, w2, b2


def pack_params(raw_params):
    """One-time host-side packing into the kernel's two lane-dense operands."""
    w1, b1, w2, b2 = raw_params
    slab = jnp.zeros((SLAB_ROWS, HIDDEN), jnp.float32)
    slab = slab.at[0:N_CLS * IN_CH, :].set(w1)
    slab = slab.at[N_CLS * IN_CH:N_CLS * IN_CH + N_CLS, :].set(b1)
    slab = slab.at[SLAB_ROWS - 1, 0:N_CLS * OUT].set(b2[0])
    w2t = jnp.transpose(w2)                    # (HIDDEN, N_CLS*OUT) = (512, 50)
    return slab, w2t


@jax.jit
def splitfc_forward(mid_results, packed_params):
    # mid_results: NCHW (B, 10, H, W)
    slab, w2t = packed_params
    B = mid_results.shape[0]

    # Only host-side glue: pick spatial (0,0). (A (B, C, 1, 1) input block would
    # violate the (8,128)/full-dim rule on the trailing block dims, so this stays
    # as a single jit-fused XLA slice feeding the kernel.)
    x00 = mid_results[:, :, 0, 0].astype(jnp.float32)          # (B, 10)

    # Single grid-less kernel invocation; all operands (< 1 MiB) are VMEM-resident
    # on v5e/v6e/v7x, 3 input DMAs total, nothing to pipeline at these sizes.
    kernel = functools.partial(_splitfc_kernel, batch=B)
    out = pl.pallas_call(
        kernel,
        out_shape=jax.ShapeDtypeStruct((N_CLS * B, OUT), jnp.float32),
        in_specs=[pl.BlockSpec(memory_space=pltpu.MemorySpace.VMEM)] * 3,
        out_specs=pl.BlockSpec(memory_space=pltpu.MemorySpace.VMEM),
    )(x00, slab, w2t)

    # Rows are already grouped classifier-major == torch.cat((w1..w5), 0)
    return out


def splitfc_reference(mid_results, raw_params):
    """Pure-JAX reference of the PyTorch forward (for validation)."""
    w1, b1, w2, b2 = raw_params
    x00 = mid_results[:, :, 0, 0].astype(jnp.float32)          # (B, 10)
    outs = []
    for g in range(N_CLS):
        h = (x00[:, 2 * g:2 * g + 1] * w1[2 * g:2 * g + 1, :]
             + x00[:, 2 * g + 1:2 * g + 2] * w1[2 * g + 1:2 * g + 2, :]
             + b1[g])
        h = _hardswish(h)
        w2g = w2[g * OUT:(g + 1) * OUT, :]                     # (10, 512)
        y = jnp.dot(h, w2g.T, preferred_element_type=jnp.float32)
        y = y + b2[0, g * OUT:(g + 1) * OUT]
        outs.append(jnp.clip(jnp.round(y * 4.0) * 0.25, -32.0, 31.75))
    return jnp.concatenate(outs, axis=0)                       # (5B, 10)


if __name__ == "__main__":
    key = jax.random.PRNGKey(0)
    k_param, k_x = jax.random.split(key)

    raw_params = init_raw_params(k_param)
    packed_params = pack_params(raw_params)

    B, C, H, W = 2, 10, 16, 16
    mid_results = jax.random.normal(k_x, (B, C, H, W), jnp.float32)

    out = splitfc_forward(mid_results, packed_params)
    out = jax.block_until_ready(out)

    ref = splitfc_reference(mid_results, raw_params)
    assert out.shape == (N_CLS * B, OUT), out.shape
    assert jnp.allclose(out, ref, atol=1e-5, rtol=1e-5), float(jnp.max(jnp.abs(out - ref)))

    print("KERNEL_OK")
</pallas_src>

<mosaic_0001>
module attributes {stable_mosaic.version = 11 : i64} {
  func.func @_splitfc_kernel(%arg0: memref<2x10xf32, #tpu.memory_space<vmem>>, %arg1: memref<16x512xf32, #tpu.memory_space<vmem>>, %arg2: memref<512x50xf32, #tpu.memory_space<vmem>>, %arg3: memref<10x10xf32, #tpu.memory_space<vmem>>) attributes {dimension_semantics = [], scalar_prefetch = 0 : i64, scratch_operands = 0 : i64, tpu.core_type = #tpu.core_type<tc>} {
    %c0 = arith.constant 0 : index
    %c0_0 = arith.constant 0 : index
    %0 = vector.load %arg0[%c0, %c0_0] : memref<2x10xf32, #tpu.memory_space<vmem>>, vector<2x10xf32>
    %c0_1 = arith.constant 0 : index
    %c0_2 = arith.constant 0 : index
    %1 = vector.load %arg1[%c0_1, %c0_2] : memref<16x512xf32, #tpu.memory_space<vmem>>, vector<16x512xf32>
    %2 = vector.extract_strided_slice %0 {offsets = [0, 0], sizes = [2, 1], strides = [1, 1]} : vector<2x10xf32> to vector<2x1xf32>
    %3 = vector.extract_strided_slice %0 {offsets = [0, 1], sizes = [2, 1], strides = [1, 1]} : vector<2x10xf32> to vector<2x1xf32>
    %4 = vector.extract_strided_slice %1 {offsets = [0, 0], sizes = [1, 512], strides = [1, 1]} : vector<16x512xf32> to vector<1x512xf32>
    %5 = vector.extract_strided_slice %1 {offsets = [1, 0], sizes = [1, 512], strides = [1, 1]} : vector<16x512xf32> to vector<1x512xf32>
    %6 = vector.extract_strided_slice %1 {offsets = [10, 0], sizes = [1, 512], strides = [1, 1]} : vector<16x512xf32> to vector<1x512xf32>
    %7 = vector.broadcast %2 : vector<2x1xf32> to vector<2x512xf32>
    %8 = vector.broadcast %4 : vector<1x512xf32> to vector<2x512xf32>
    %9 = arith.mulf %7, %8 : vector<2x512xf32>
    %10 = vector.broadcast %3 : vector<2x1xf32> to vector<2x512xf32>
    %11 = vector.broadcast %5 : vector<1x512xf32> to vector<2x512xf32>
    %12 = arith.mulf %10, %11 : vector<2x512xf32>
    %13 = arith.addf %9, %12 : vector<2x512xf32>
    %14 = vector.broadcast %6 : vector<1x512xf32> to vector<2x512xf32>
    %15 = arith.addf %13, %14 : vector<2x512xf32>
    %16 = vector.extract_strided_slice %0 {offsets = [0, 2], sizes = [2, 1], strides = [1, 1]} : vector<2x10xf32> to vector<2x1xf32>
    %17 = vector.extract_strided_slice %0 {offsets = [0, 3], sizes = [2, 1], strides = [1, 1]} : vector<2x10xf32> to vector<2x1xf32>
    %18 = vector.extract_strided_slice %1 {offsets = [2, 0], sizes = [1, 512], strides = [1, 1]} : vector<16x512xf32> to vector<1x512xf32>
    %19 = vector.extract_strided_slice %1 {offsets = [3, 0], sizes = [1, 512], strides = [1, 1]} : vector<16x512xf32> to vector<1x512xf32>
    %20 = vector.extract_strided_slice %1 {offsets = [11, 0], sizes = [1, 512], strides = [1, 1]} : vector<16x512xf32> to vector<1x512xf32>
    %21 = vector.broadcast %16 : vector<2x1xf32> to vector<2x512xf32>
    %22 = vector.broadcast %18 : vector<1x512xf32> to vector<2x512xf32>
    %23 = arith.mulf %21, %22 : vector<2x512xf32>
    %24 = vector.broadcast %17 : vector<2x1xf32> to vector<2x512xf32>
    %25 = vector.broadcast %19 : vector<1x512xf32> to vector<2x512xf32>
    %26 = arith.mulf %24, %25 : vector<2x512xf32>
    %27 = arith.addf %23, %26 : vector<2x512xf32>
    %28 = vector.broadcast %20 : vector<1x512xf32> to vector<2x512xf32>
    %29 = arith.addf %27, %28 : vector<2x512xf32>
    %30 = vector.extract_strided_slice %0 {offsets = [0, 4], sizes = [2, 1], strides = [1, 1]} : vector<2x10xf32> to vector<2x1xf32>
    %31 = vector.extract_strided_slice %0 {offsets = [0, 5], sizes = [2, 1], strides = [1, 1]} : vector<2x10xf32> to vector<2x1xf32>
    %32 = vector.extract_strided_slice %1 {offsets = [4, 0], sizes = [1, 512], strides = [1, 1]} : vector<16x512xf32> to vector<1x512xf32>
    %33 = vector.extract_strided_slice %1 {offsets = [5, 0], sizes = [1, 512], strides = [1, 1]} : vector<16x512xf32> to vector<1x512xf32>
    %34 = vector.extract_strided_slice %1 {offsets = [12, 0], sizes = [1, 512], strides = [1, 1]} : vector<16x512xf32> to vector<1x512xf32>
    %35 = vector.broadcast %30 : vector<2x1xf32> to vector<2x512xf32>
    %36 = vector.broadcast %32 : vector<1x512xf32> to vector<2x512xf32>
    %37 = arith.mulf %35, %36 : vector<2x512xf32>
    %38 = vector.broadcast %31 : vector<2x1xf32> to vector<2x512xf32>
    %39 = vector.broadcast %33 : vector<1x512xf32> to vector<2x512xf32>
    %40 = arith.mulf %38, %39 : vector<2x512xf32>
    %41 = arith.addf %37, %40 : vector<2x512xf32>
    %42 = vector.broadcast %34 : vector<1x512xf32> to vector<2x512xf32>
    %43 = arith.addf %41, %42 : vector<2x512xf32>
    %44 = vector.extract_strided_slice %0 {offsets = [0, 6], sizes = [2, 1], strides = [1, 1]} : vector<2x10xf32> to vector<2x1xf32>
    %45 = vector.extract_strided_slice %0 {offsets = [0, 7], sizes = [2, 1], strides = [1, 1]} : vector<2x10xf32> to vector<2x1xf32>
    %46 = vector.extract_strided_slice %1 {offsets = [6, 0], sizes = [1, 512], strides = [1, 1]} : vector<16x512xf32> to vector<1x512xf32>
    %47 = vector.extract_strided_slice %1 {offsets = [7, 0], sizes = [1, 512], strides = [1, 1]} : vector<16x512xf32> to vector<1x512xf32>
    %48 = vector.extract_strided_slice %1 {offsets = [13, 0], sizes = [1, 512], strides = [1, 1]} : vector<16x512xf32> to vector<1x512xf32>
    %49 = vector.broadcast %44 : vector<2x1xf32> to vector<2x512xf32>
    %50 = vector.broadcast %46 : vector<1x512xf32> to vector<2x512xf32>
    %51 = arith.mulf %49, %50 : vector<2x512xf32>
    %52 = vector.broadcast %45 : vector<2x1xf32> to vector<2x512xf32>
    %53 = vector.broadcast %47 : vector<1x512xf32> to vector<2x512xf32>
    %54 = arith.mulf %52, %53 : vector<2x512xf32>
    %55 = arith.addf %51, %54 : vector<2x512xf32>
    %56 = vector.broadcast %48 : vector<1x512xf32> to vector<2x512xf32>
    %57 = arith.addf %55, %56 : vector<2x512xf32>
    %58 = vector.extract_strided_slice %0 {offsets = [0, 8], sizes = [2, 1], strides = [1, 1]} : vector<2x10xf32> to vector<2x1xf32>
    %59 = vector.extract_strided_slice %0 {offsets = [0, 9], sizes = [2, 1], strides = [1, 1]} : vector<2x10xf32> to vector<2x1xf32>
    %60 = vector.extract_strided_slice %1 {offsets = [8, 0], sizes = [1, 512], strides = [1, 1]} : vector<16x512xf32> to vector<1x512xf32>
    %61 = vector.extract_strided_slice %1 {offsets = [9, 0], sizes = [1, 512], strides = [1, 1]} : vector<16x512xf32> to vector<1x512xf32>
    %62 = vector.extract_strided_slice %1 {offsets = [14, 0], sizes = [1, 512], strides = [1, 1]} : vector<16x512xf32> to vector<1x512xf32>
    %63 = vector.broadcast %58 : vector<2x1xf32> to vector<2x512xf32>
    %64 = vector.broadcast %60 : vector<1x512xf32> to vector<2x512xf32>
    %65 = arith.mulf %63, %64 : vector<2x512xf32>
    %66 = vector.broadcast %59 : vector<2x1xf32> to vector<2x512xf32>
    %67 = vector.broadcast %61 : vector<1x512xf32> to vector<2x512xf32>
    %68 = arith.mulf %66, %67 : vector<2x512xf32>
    %69 = arith.addf %65, %68 : vector<2x512xf32>
    %70 = vector.broadcast %62 : vector<1x512xf32> to vector<2x512xf32>
    %71 = arith.addf %69, %70 : vector<2x512xf32>
    %72 = tpu.concatenate %15, %29, %43, %57, %71 in 0 : vector<2x512xf32>, vector<2x512xf32>, vector<2x512xf32>, vector<2x512xf32>, vector<2x512xf32> -> vector<10x512xf32>
    %cst = arith.constant 3.000000e+00 : f32
    %73 = vector.broadcast %cst : f32 to vector<10x512xf32>
    %74 = arith.addf %72, %73 : vector<10x512xf32>
    %cst_3 = arith.constant 0.000000e+00 : f32
    %cst_4 = arith.constant 6.000000e+00 : f32
    %75 = vector.broadcast %cst_3 : f32 to vector<10x512xf32>
    %76 = arith.maximumf %75, %74 : vector<10x512xf32>
    %77 = vector.broadcast %cst_4 : f32 to vector<10x512xf32>
    %78 = arith.minimumf %77, %76 : vector<10x512xf32>
    %79 = arith.mulf %72, %78 : vector<10x512xf32>
    %cst_5 = arith.constant 0.166666672 : f32
    %80 = vector.broadcast %cst_5 : f32 to vector<10x512xf32>
    %81 = arith.mulf %79, %80 : vector<10x512xf32>
    %c0_6 = arith.constant 0 : index
    %c0_7 = arith.constant 0 : index
    %82 = vector.load %arg2[%c0_6, %c0_7] : memref<512x50xf32, #tpu.memory_space<vmem>>, vector<512x50xf32>
    %cst_8 = arith.constant dense<0.000000e+00> : vector<10x50xf32>
    %83 = tpu.matmul %81, %82, %cst_8 {dimension_numbers = #tpu.dot_dimension_numbers<[1], [0], [0], [1], [0, 0, 1, 1], [], []>} : vector<10x512xf32>, vector<512x50xf32>, vector<10x50xf32> -> vector<10x50xf32>
    %84 = vector.extract_strided_slice %1 {offsets = [15, 0], sizes = [1, 50], strides = [1, 1]} : vector<16x512xf32> to vector<1x50xf32>
    %85 = vector.broadcast %84 : vector<1x50xf32> to vector<10x50xf32>
    %86 = arith.addf %83, %85 : vector<10x50xf32>
    %87 = vector.extract_strided_slice %86 {offsets = [0, 0], sizes = [2, 10], strides = [1, 1]} : vector<10x50xf32> to vector<2x10xf32>
    %cst_9 = arith.constant 4.000000e+00 : f32
    %88 = vector.broadcast %cst_9 : f32 to vector<2x10xf32>
    %89 = arith.mulf %87, %88 : vector<2x10xf32>
    %90 = math.roundeven %89 : vector<2x10xf32>
    %cst_10 = arith.constant 2.500000e-01 : f32
    %91 = vector.broadcast %cst_10 : f32 to vector<2x10xf32>
    %92 = arith.mulf %90, %91 : vector<2x10xf32>
    %cst_11 = arith.constant -3.200000e+01 : f32
    %cst_12 = arith.constant 3.175000e+01 : f32
    %93 = vector.broadcast %cst_11 : f32 to vector<2x10xf32>
    %94 = arith.maximumf %93, %92 : vector<2x10xf32>
    %95 = vector.broadcast %cst_12 : f32 to vector<2x10xf32>
    %96 = arith.minimumf %95, %94 : vector<2x10xf32>
    %c0_13 = arith.constant 0 : index
    %c0_14 = arith.constant 0 : index
    %97 = vector.load %arg3[%c0_13, %c0_14] : memref<10x10xf32, #tpu.memory_space<vmem>>, vector<2x10xf32>
    tpu.vector_store %arg3[%c0_13, %c0_14], %96 {strides = array<i32>} : memref<10x10xf32, #tpu.memory_space<vmem>>, vector<2x10xf32>,
    %98 = vector.extract_strided_slice %86 {offsets = [2, 10], sizes = [2, 10], strides = [1, 1]} : vector<10x50xf32> to vector<2x10xf32>
    %cst_15 = arith.constant 4.000000e+00 : f32
    %99 = vector.broadcast %cst_15 : f32 to vector<2x10xf32>
    %100 = arith.mulf %98, %99 : vector<2x10xf32>
    %101 = math.roundeven %100 : vector<2x10xf32>
    %cst_16 = arith.constant 2.500000e-01 : f32
    %102 = vector.broadcast %cst_16 : f32 to vector<2x10xf32>
    %103 = arith.mulf %101, %102 : vector<2x10xf32>
    %cst_17 = arith.constant -3.200000e+01 : f32
    %cst_18 = arith.constant 3.175000e+01 : f32
    %104 = vector.broadcast %cst_17 : f32 to vector<2x10xf32>
    %105 = arith.maximumf %104, %103 : vector<2x10xf32>
    %106 = vector.broadcast %cst_18 : f32 to vector<2x10xf32>
    %107 = arith.minimumf %106, %105 : vector<2x10xf32>
    %c2 = arith.constant 2 : index
    %c0_19 = arith.constant 0 : index
    %108 = vector.load %arg3[%c2, %c0_19] : memref<10x10xf32, #tpu.memory_space<vmem>>, vector<2x10xf32>
    tpu.vector_store %arg3[%c2, %c0_19], %107 {strides = array<i32>} : memref<10x10xf32, #tpu.memory_space<vmem>>, vector<2x10xf32>,
    %109 = vector.extract_strided_slice %86 {offsets = [4, 20], sizes = [2, 10], strides = [1, 1]} : vector<10x50xf32> to vector<2x10xf32>
    %cst_20 = arith.constant 4.000000e+00 : f32
    %110 = vector.broadcast %cst_20 : f32 to vector<2x10xf32>
    %111 = arith.mulf %109, %110 : vector<2x10xf32>
    %112 = math.roundeven %111 : vector<2x10xf32>
    %cst_21 = arith.constant 2.500000e-01 : f32
    %113 = vector.broadcast %cst_21 : f32 to vector<2x10xf32>
    %114 = arith.mulf %112, %113 : vector<2x10xf32>
    %cst_22 = arith.constant -3.200000e+01 : f32
    %cst_23 = arith.constant 3.175000e+01 : f32
    %115 = vector.broadcast %cst_22 : f32 to vector<2x10xf32>
    %116 = arith.maximumf %115, %114 : vector<2x10xf32>
    %117 = vector.broadcast %cst_23 : f32 to vector<2x10xf32>
    %118 = arith.minimumf %117, %116 : vector<2x10xf32>
    %c4 = arith.constant 4 : index
    %c0_24 = arith.constant 0 : index
    %119 = vector.load %arg3[%c4, %c0_24] : memref<10x10xf32, #tpu.memory_space<vmem>>, vector<2x10xf32>
    tpu.vector_store %arg3[%c4, %c0_24], %118 {strides = array<i32>} : memref<10x10xf32, #tpu.memory_space<vmem>>, vector<2x10xf32>,
    %120 = vector.extract_strided_slice %86 {offsets = [6, 30], sizes = [2, 10], strides = [1, 1]} : vector<10x50xf32> to vector<2x10xf32>
    %cst_25 = arith.constant 4.000000e+00 : f32
    %121 = vector.broadcast %cst_25 : f32 to vector<2x10xf32>
    %122 = arith.mulf %120, %121 : vector<2x10xf32>
    %123 = math.roundeven %122 : vector<2x10xf32>
    %cst_26 = arith.constant 2.500000e-01 : f32
    %124 = vector.broadcast %cst_26 : f32 to vector<2x10xf32>
    %125 = arith.mulf %123, %124 : vector<2x10xf32>
    %cst_27 = arith.constant -3.200000e+01 : f32
    %cst_28 = arith.constant 3.175000e+01 : f32
    %126 = vector.broadcast %cst_27 : f32 to vector<2x10xf32>
    %127 = arith.maximumf %126, %125 : vector<2x10xf32>
    %128 = vector.broadcast %cst_28 : f32 to vector<2x10xf32>
    %129 = arith.minimumf %128, %127 : vector<2x10xf32>
    %c6 = arith.constant 6 : index
    %c0_29 = arith.constant 0 : index
    %130 = vector.load %arg3[%c6, %c0_29] : memref<10x10xf32, #tpu.memory_space<vmem>>, vector<2x10xf32>
    tpu.vector_store %arg3[%c6, %c0_29], %129 {strides = array<i32>} : memref<10x10xf32, #tpu.memory_space<vmem>>, vector<2x10xf32>,
    %131 = vector.extract_strided_slice %86 {offsets = [8, 40], sizes = [2, 10], strides = [1, 1]} : vector<10x50xf32> to vector<2x10xf32>
    %cst_30 = arith.constant 4.000000e+00 : f32
    %132 = vector.broadcast %cst_30 : f32 to vector<2x10xf32>
    %133 = arith.mulf %131, %132 : vector<2x10xf32>
    %134 = math.roundeven %133 : vector<2x10xf32>
    %cst_31 = arith.constant 2.500000e-01 : f32
    %135 = vector.broadcast %cst_31 : f32 to vector<2x10xf32>
    %136 = arith.mulf %134, %135 : vector<2x10xf32>
    %cst_32 = arith.constant -3.200000e+01 : f32
    %cst_33 = arith.constant 3.175000e+01 : f32
    %137 = vector.broadcast %cst_32 : f32 to vector<2x10xf32>
    %138 = arith.maximumf %137, %136 : vector<2x10xf32>
    %139 = vector.broadcast %cst_33 : f32 to vector<2x10xf32>
    %140 = arith.minimumf %139, %138 : vector<2x10xf32>
    %c8 = arith.constant 8 : index
    %c0_34 = arith.constant 0 : index
    %141 = vector.load %arg3[%c8, %c0_34] : memref<10x10xf32, #tpu.memory_space<vmem>>, vector<2x10xf32>
    tpu.vector_store %arg3[%c8, %c0_34], %140 {strides = array<i32>} : memref<10x10xf32, #tpu.memory_space<vmem>>, vector<2x10xf32>,
    return
  }
}

</mosaic_0001>

<bundles_post_ra>
// kernel: splitfc_forward.1
= control target key start
LH: loop header
LB: loop body
LE: loop exit
PB: predicated region body
PF: predicated region fallthrough
CT: control target
= control target key end

     0   :  { %v937_v1 = vmov 4   ;;  %v938_v2 = vmov 2   ;;  %s1553_s0 = inlined_call_operand.vmem [shape: f32[2,10], index: 0, kind: input, shape index: {}]   ;;  %s1554_s1 = inlined_call_operand.vmem [shape: f32[16,512], index: 1, kind: input, shape index: {}]   ;;  %s1555_s2 = inlined_call_operand.vmem [shape: f32[512,50], index: 2, kind: input, shape index: {}]   ;;  %s1556_s3 = inlined_call_operand.hbm [shape: f32[10,10], index: 3, kind: output, shape index: {}]  }
   0x1   :  { %v977_v0 = vld [vmem:[%s1553_s0] sm:$0x3]  ;;  %904 = vset.pattern.permute.xlu1 %v937_v1  ;;  %902 = vset.pattern.permute.xlu0 %v938_v2 }
   0x2   :  { %170 = vperm.xlu1 %904, %v977_v0   ;;  %98 = vperm.xlu0 %902, %v977_v0  }
   0x3   :  { %8 = vsyncpa [#allocation3], 0  ;;  %v939_v3 = vmov 5   ;;  %v940_v4 = vmov 3   ;;  %v492_v5 = vld [vmem:[%s1555_s2 + $0x80] sm:$0xff]  ;;  %v493_v6 = vld [vmem:[%s1555_s2 + $0x88] sm:$0xff] }
   0x4   :  { %v941_v7 = vmov 0   ;;  %v942_v8 = vmov 1   ;;  %v524_v9 = vld [vmem:[%s1555_s2 + $0x180] sm:$0xff]  ;;  %v525_v10 = vld [vmem:[%s1555_s2 + $0x188] sm:$0xff]  ;;  %v819_v15 = vpack.c.bf16 %v493_v6, %v492_v5  ;;  %v494_v19 = vld [vmem:[%s1555_s2 + $0x90] sm:$0xff]  ;;  %v943_v22 = vmov 6  }
   0x5   :  { %v476_v11 = vld [vmem:[%s1555_s2] sm:$0xff]  ;;  %v477_v12 = vld [vmem:[%s1555_s2 + $0x8] sm:$0xff]  ;;  %v851_v16 = vpack.c.bf16 %v525_v10, %v524_v9  ;;  %v495_v20 = vld [vmem:[%s1555_s2 + $0x98] sm:$0xff]  ;;  %v944_v23 = vmov 8   ;;  %v945_v39 = vmov 7   ;;  %v946_v56 = vmov 9  }
   0x6   :  { %905 = vset.pattern.permute.xlu1 %v939_v3  ;;  %903 = vset.pattern.permute.xlu0 %v940_v4  ;;  %v508_v13 = vld [vmem:[%s1555_s2 + $0x100] sm:$0xff]  ;;  %v509_v14 = vld [vmem:[%s1555_s2 + $0x108] sm:$0xff]  ;;  %v821_v17 = vpack.c.bf16 %v477_v12, %v476_v11  ;;  %v526_v21 = vld [vmem:[%s1555_s2 + $0x190] sm:$0xff]  ;;  %v823_v29 = vpack.c.bf16 %v495_v20, %v494_v19  ;;  %vm421_vm0 = vcmask 1041408   ;;  %vm426_vm1 = vcmask 1043456   ;;  %s948_s16 = smov 118  }
   0x7   :  { %194 = vperm.xlu1 %905, %v977_v0   ;;  %122 = vperm.xlu0 %903, %v977_v0   ;;  %v853_v18 = vpack.c.bf16 %v509_v14, %v508_v13  ;;  %v527_v24 = vld [vmem:[%s1555_s2 + $0x198] sm:$0xff]  ;;  %v478_v25 = vld [vmem:[%s1555_s2 + $0x10] sm:$0xff]  ;;  %v496_v33 = vld [vmem:[%s1555_s2 + $0xa0] sm:$0xff]  ;;  %vm431_vm2 = vcmask 1045504   ;;  %vm699_vm3 = vcmask 74752   ;;  %s949_s17 = smov 98  }
   0x8   :  { %v479_v26 = vld [vmem:[%s1555_s2 + $0x18] sm:$0xff]  ;;  %v510_v27 = vld [vmem:[%s1555_s2 + $0x110] sm:$0xff]  ;;  %820 = vmatprep.subr.bf16.mxu0 %v819_v15  ;;  %852 = vmatprep.subr.bf16.mxu1 %v851_v16  ;;  %v855_v30 = vpack.c.bf16 %v527_v24, %v526_v21  ;;  %v497_v34 = vld [vmem:[%s1555_s2 + $0xa8] sm:$0xff]  ;;  %s950_s18 = smov 88   ;;  %vm705_vm4 = vcmask 76802   ;;  %vm710_vm5 = vcmask 78852  }
   0x9   :  { %v511_v28 = vld [vmem:[%s1555_s2 + $0x118] sm:$0xff]  ;;  %822 = vmatpush3.bf16.msra.mxu0 %v821_v17  ;;  %854 = vmatpush3.bf16.msra.mxu1 %v853_v18  ;;  %v825_v31 = vpack.c.bf16 %v479_v26, %v478_v25  ;;  %v528_v35 = vld [vmem:[%s1555_s2 + $0x1a0] sm:$0xff]  ;;  %v529_v36 = vld [vmem:[%s1555_s2 + $0x1a8] sm:$0xff]  ;;  %v827_v40 = vpack.c.bf16 %v497_v34, %v496_v33  ;;  %s951_s19 = smov [#allocation2]   ;;  %vm715_vm6 = vcmask 80902  }
   0xa   :  { %v857_v32 = vpack.c.bf16 %v511_v28, %v510_v27  ;;  %824 = vmatprep.subr.bf16.mxu0 %v823_v29  ;;  %v480_v37 = vld [vmem:[%s1555_s2 + $0x20] sm:$0xff]  ;;  %v481_v38 = vld [vmem:[%s1555_s2 + $0x28] sm:$0xff]  ;;  %856 = vmatprep.subr.bf16.mxu1 %v855_v30  ;;  %v859_v41 = vpack.c.bf16 %v529_v36, %v528_v35  ;;  %v498_v45 = vld [vmem:[%s1555_s2 + $0xb0] sm:$0xff]  ;;  %s732_s20 = sshll.u32 %s951_s19, 4  ;;  %s733_s20 = int_to_ptr.vmem [resolvable:$true] %s732_s20 }
   0xb   :  { %906 = vset.pattern.permute.xlu1 %v941_v7  ;;  %907 = vset.pattern.permute.xlu0 %v942_v8  ;;  %v512_v42 = vld [vmem:[%s1555_s2 + $0x120] sm:$0xff]  ;;  %v513_v43 = vld [vmem:[%s1555_s2 + $0x128] sm:$0xff]  ;;  %v829_v44 = vpack.c.bf16 %v481_v38, %v480_v37  ;;  %v499_v46 = vld [vmem:[%s1555_s2 + $0xb8] sm:$0xff]  ;;  %s913_s21 = scalar_lea.vmem %s733_s20, 256  ;;  %p918_p1 = scmp.lt.s32.totalorder %s733_s20, %s733_s20 }
   0xc   :  { %26 = vperm.xlu1 %906, %v977_v0   ;;  %50 = vperm.xlu0 %907, %v977_v0   ;;  %v530_v47 = vld [vmem:[%s1555_s2 + $0x1b0] sm:$0xff]  ;;  %v861_v48 = vpack.c.bf16 %v513_v43, %v512_v42  ;;  %v831_v49 = vpack.c.bf16 %v499_v46, %v498_v45  ;;  %v531_v50 = vld [vmem:[%s1555_s2 + $0x1b8] sm:$0xff]  ;;  %v500_v57 = vld [vmem:[%s1555_s2 + $0xc0] sm:$0xff]  ;;  %v29_v43 = vlaneseq  ;;  %p914_p0 = scmp.ne.s32.totalorder %s733_s20, %s913_s21  ;;  %p919_p2 = scmp.lt.s32.totalorder %s913_s21, %s913_s21 }
   0xd   :  { %826 = vmatpush3.bf16.msra.mxu0 %v825_v31  ;;  %858 = vmatpush3.bf16.msra.mxu1 %v857_v32  ;;  %v482_v51 = vld [vmem:[%s1555_s2 + $0x30] sm:$0xff]  ;;  %v483_v52 = vld [vmem:[%s1555_s2 + $0x38] sm:$0xff]  ;;  %v863_v53 = vpack.c.bf16 %v531_v50, %v530_v47  ;;  %v501_v58 = vld [vmem:[%s1555_s2 + $0xc8] sm:$0xff] }
   0xe   :  { %828 = vmatprep.subr.bf16.mxu0 %v827_v40  ;;  %860 = vmatprep.subr.bf16.mxu1 %v859_v41  ;;  %v514_v54 = vld [vmem:[%s1555_s2 + $0x130] sm:$0xff]  ;;  %v515_v55 = vld [vmem:[%s1555_s2 + $0x138] sm:$0xff]  ;;  %v532_v59 = vld [vmem:[%s1555_s2 + $0x1c0] sm:$0xff]  ;;  %v833_v60 = vpack.c.bf16 %v483_v52, %v482_v51  ;;  %v835_v63 = vpack.c.bf16 %v501_v58, %v500_v57  ;;  %p920_p3 = por %p919_p2, %p918_p1 }
   0xf   :  { %v533_v61 = vld [vmem:[%s1555_s2 + $0x1c8] sm:$0xff]  ;;  %v865_v62 = vpack.c.bf16 %v515_v55, %v514_v54  ;;  %v484_v1 = vld [vmem:[%s1555_s2 + $0x40] sm:$0xff]  ;;  %v502_v5 = vld [vmem:[%s1555_s2 + $0xd0] sm:$0xff] }
  0x10   :  { %908 = vset.pattern.permute.xlu1 %v943_v22  ;;  %910 = vset.pattern.permute.xlu0 %v944_v23  ;;  %v485_v2 = vld [vmem:[%s1555_s2 + $0x48] sm:$0xff]  ;;  %v867_v3 = vpack.c.bf16 %v533_v61, %v532_v59  ;;  %v503_v6 = vld [vmem:[%s1555_s2 + $0xd8] sm:$0xff]  ;;  %v534_v7 = vld [vmem:[%s1555_s2 + $0x1d0] sm:$0xff]  ;;  %p921_p4 = pnand %p920_p3, %p914_p0 }
  0x11   :  { %242 = vperm.xlu1 %908, %v977_v0   ;;  %314 = vperm.xlu0 %910, %v977_v0   ;;  %v517_v4 = vld [vmem:[%s1555_s2 + $0x148] sm:$0xff]  ;;  %v535_v8 = vld [vmem:[%s1555_s2 + $0x1d8] sm:$0xff]  ;;  %v837_v9 = vpack.c.bf16 %v485_v2, %v484_v1  ;;  %v839_v11 = vpack.c.bf16 %v503_v6, %v502_v5  ;;  %v486_v12 = vld [vmem:[%s1555_s2 + $0x50] sm:$0xff] }
  0x12   :  { %830 = vmatpush3.bf16.msra.mxu0 %v829_v44  ;;  %862 = vmatpush3.bf16.msra.mxu1 %v861_v48  ;;  %v487_v13 = vld [vmem:[%s1555_s2 + $0x58] sm:$0xff]  ;;  %v518_v14 = vld [vmem:[%s1555_s2 + $0x150] sm:$0xff]  ;;  %v871_v15 = vpack.c.bf16 %v535_v8, %v534_v7  ;;  %v504_v17 = vld [vmem:[%s1555_s2 + $0xe0] sm:$0xff]  ;;  %v30_v44 = vshrl.u32 %v29_v43, 7 }
  0x13   :  { %832 = vmatprep.subr.bf16.mxu0 %v831_v49  ;;  %864 = vmatprep.subr.bf16.mxu1 %v863_v53  ;;  %v519_v16 = vld [vmem:[%s1555_s2 + $0x158] sm:$0xff]  ;;  %v505_v18 = vld [vmem:[%s1555_s2 + $0xe8] sm:$0xff]  ;;  %v536_v19 = vld [vmem:[%s1555_s2 + $0x1e0] sm:$0xff]  ;;  %v841_v21 = vpack.c.bf16 %v487_v13, %v486_v12 }
  0x14   :  { %v537_v20 = vld [vmem:[%s1555_s2 + $0x1e8] sm:$0xff]  ;;  %v873_v22 = vpack.c.bf16 %v519_v16, %v518_v14  ;;  %v843_v23 = vpack.c.bf16 %v505_v18, %v504_v17  ;;  %v488_v24 = vld [vmem:[%s1555_s2 + $0x60] sm:$0xff]  ;;  %v506_v29 = vld [vmem:[%s1555_s2 + $0xf0] sm:$0xff]  ;;  %v1186_v46 = vsub.s32 4, %v30_v44  ;;  %v1203_v50 = vsub.s32 2, %v30_v44 }
  0x15   :  { %909 = vset.pattern.permute.xlu1 %v945_v39  ;;  %912 = vset.pattern.permute.xlu0 %v946_v56  ;;  %v489_v25 = vld [vmem:[%s1555_s2 + $0x68] sm:$0xff]  ;;  %v520_v26 = vld [vmem:[%s1555_s2 + $0x160] sm:$0xff]  ;;  %v875_v27 = vpack.c.bf16 %v537_v20, %v536_v19  ;;  %v507_v30 = vld [vmem:[%s1555_s2 + $0xf8] sm:$0xff]  ;;  %v1205_v51 = vsub.s32 5, %v30_v44  ;;  %v1207_v52 = vsub.s32 3, %v30_v44  ;;  %v1249_v6 = vsub.s32 1, %v30_v44 }
  0x16   :  { %266 = vperm.xlu1 %909, %v977_v0   ;;  %834 = vmatpush3.bf16.msra.mxu0 %v833_v60  ;;  %v521_v28 = vld [vmem:[%s1555_s2 + $0x168] sm:$0xff]  ;;  %v538_v31 = vld [vmem:[%s1555_s2 + $0x1f0] sm:$0xff]  ;;  %v539_v32 = vld [vmem:[%s1555_s2 + $0x1f8] sm:$0xff]  ;;  %v845_v33 = vpack.c.bf16 %v489_v25, %v488_v24  ;;  %v847_v35 = vpack.c.bf16 %v507_v30, %v506_v29  ;;  %v1275_v16 = vsub.s32 6, %v30_v44  ;;  %v1291_v24 = vsub.s32 7, %v30_v44 }
  0x17   :  { %866 = vmatpush3.bf16.msra.mxu1 %v865_v62  ;;  %836 = vmatprep.subr.bf16.mxu0 %v835_v63  ;;  %v877_v34 = vpack.c.bf16 %v521_v28, %v520_v26  ;;  %v490_v36 = vld [vmem:[%s1555_s2 + $0x70] sm:$0xff]  ;;  %v491_v37 = vld [vmem:[%s1555_s2 + $0x78] sm:$0xff]  ;;  %v879_v38 = vpack.c.bf16 %v539_v32, %v538_v31  ;;  %v1184_v45 = vld [vmem:[%s1554_s1] sm:$0xff] }
  0x18   :  { %868 = vmatprep.subr.bf16.mxu1 %v867_v3  ;;  %v522_v39 = vld [vmem:[%s1555_s2 + $0x170] sm:$0xff]  ;;  %v523_v40 = vld [vmem:[%s1555_s2 + $0x178] sm:$0xff]  ;;  %v849_v41 = vpack.c.bf16 %v491_v37, %v490_v36  ;;  %v1191_v47 = vld [vmem:[%s1554_s1 + $0x8] sm:$0xff]  ;;  %v176_v53 = vrot.slane %v1184_v45, %v1186_v46  ;;  %v104_v59 = vrot.slane %v1184_v45, %v1203_v50  ;;  %v200_v63 = vrot.slane %v1184_v45, %v1205_v51 }
  0x19   :  { %v881_v42 = vpack.c.bf16 %v523_v40, %v522_v39  ;;  %v1196_v48 = vld [vmem:[%s1554_s1 + $0x10] sm:$0xff]  ;;  %v1201_v49 = vld [vmem:[%s1554_s1 + $0x18] sm:$0xff]  ;;  %v180_v54 = vrot.slane %v1191_v47, %v1186_v46  ;;  %v1220_v57 = vld [vmem:[%s1554_s1 + $0x20] sm:$0xff]  ;;  %v108_v60 = vrot.slane %v1191_v47, %v1203_v50  ;;  %v204_v1 = vrot.slane %v1191_v47, %v1205_v51 }
  0x1a   :  { %911 = vset.pattern.permute.xlu1 %v946_v56  ;;  %838 = vmatpush3.bf16.msra.mxu0 %v837_v9  ;;  %v184_v55 = vrot.slane %v1196_v48, %v1186_v46  ;;  %v188_v56 = vrot.slane %v1201_v49, %v1186_v46  ;;  %v1225_v58 = vld [vmem:[%s1554_s1 + $0x30] sm:$0xff]  ;;  %v112_v61 = vrot.slane %v1196_v48, %v1203_v50  ;;  %v1254_v7 = vld [vmem:[%s1554_s1 + $0x28] sm:$0xff]  ;;  %v1267_v12 = vld [vmem:[%s1554_s1 + $0x38] sm:$0xff]  ;;  %s947_s1 = smov 108  }
  0x1b   :  { %338 = vperm.xlu1 %911, %v977_v0   ;;  %v516_v0 = vld [vmem:[%s1555_s2 + $0x140] sm:$0xff]  ;;  %840 = vmatprep.subr.bf16.mxu0 %v839_v11  ;;  %v116_v62 = vrot.slane %v1201_v49, %v1203_v50  ;;  %v208_v2 = vrot.slane %v1196_v48, %v1205_v51  ;;  %v212_v3 = vrot.slane %v1201_v49, %v1205_v51 }
  0x1c   :  { %v869_v10 = vpack.c.bf16 %v517_v4, %v516_v0  ;;  %v1241_v0 = vsub.s32 0, %v30_v44  ;;  %v224_v4 = vrot.slane %v1220_v57, %v1186_v46  ;;  %v232_v5 = vrot.slane %v1225_v58, %v1186_v46 }
  0x1d   :  { %v128_v8 = vrot.slane %v1184_v45, %v1207_v52  ;;  %v132_v9 = vrot.slane %v1191_v47, %v1207_v52  ;;  %v140_v11 = vrot.slane %v1201_v49, %v1207_v52  ;;  %v152_v13 = vrot.slane %v1220_v57, %v1207_v52 }
  0x1e   :  { %870 = vmatpush3.bf16.msra.mxu1 %v869_v10  ;;  %842 = vmatpush3.bf16.msra.mxu0 %v841_v21  ;;  %v136_v10 = vrot.slane %v1196_v48, %v1207_v52  ;;  %v156_v14 = vrot.slane %v1254_v7, %v1207_v52  ;;  %v164_v17 = vrot.slane %v1267_v12, %v1207_v52 }
  0x1f   :  { %872 = vmatprep.subr.bf16.mxu1 %v871_v15  ;;  %844 = vmatprep.subr.bf16.mxu0 %v843_v23  ;;  %v160_v15 = vrot.slane %v1225_v58, %v1207_v52  ;;  %v32_v18 = vrot.slane %v1184_v45, %v1241_v0  ;;  %v36_v19 = vrot.slane %v1191_v47, %v1241_v0 }
  0x20   :  { %v40_v20 = vrot.slane %v1196_v48, %v1241_v0  ;;  %v44_v21 = vrot.slane %v1201_v49, %v1241_v0  ;;  %v60_v23 = vrot.slane %v1191_v47, %v1249_v6  ;;  %v64_v25 = vrot.slane %v1196_v48, %v1249_v6 }
  0x21   :  { %v68_v26 = vrot.slane %v1201_v49, %v1249_v6 }
  0x22   :  { %874 = vmatpush3.bf16.msra.mxu1 %v873_v22  ;;  %846 = vmatpush3.bf16.msra.mxu0 %v845_v33  ;;  %v56_v22 = vrot.slane %v1184_v45, %v1249_v6 }
  0x23   :  { %876 = vmatprep.subr.bf16.mxu1 %v875_v27  ;;  %848 = vmatprep.subr.bf16.mxu0 %v847_v35  ;;  %v236_v35 = vrot.slane %v1267_v12, %v1186_v46 }
  0x26   :  { %878 = vmatpush3.bf16.msra.mxu1 %v877_v34  ;;  %850 = vmatpush3.bf16.msra.mxu0 %v849_v41 }
  0x27   :  { %880 = vmatprep.subr.bf16.mxu1 %v879_v38 }
  0x2a   :  { %882 = vmatpush3.bf16.msra.mxu1 %v881_v42  ;;  %v228_v42 = vrot.slane %v1254_v7, %v1186_v46  ;;  %v368_v46 = vrot.slane %v1220_v57, %v1275_v16 }
  0x81   :  { %v171_v37 = vpop.permute.xlu1 %170  ;;  %v99_v38 = vpop.permute.xlu0 %98 }
  0x82   :  { %v189_v41 = vmul.f32 %v176_v53, %v171_v37  ;;  %v190_v43 = vmul.f32 %v180_v54, %v171_v37  ;;  %v191_v44 = vmul.f32 %v184_v55, %v171_v37  ;;  %v192_v36 = vmul.f32 %v188_v56, %v171_v37 }
  0x83   :  { %v117_v40 = vmul.f32 %v104_v59, %v99_v38  ;;  %v118_v53 = vmul.f32 %v108_v60, %v99_v38  ;;  %v119_v54 = vmul.f32 %v112_v61, %v99_v38  ;;  %v120_v55 = vmul.f32 %v116_v62, %v99_v38 }
  0x86   :  { %v195_v34 = vpop.permute.xlu1 %194  ;;  %v123_v39 = vpop.permute.xlu0 %122 }
  0x87   :  { %v213_v56 = vmul.f32 %v200_v63, %v195_v34  ;;  %v214_v59 = vmul.f32 %v204_v1, %v195_v34  ;;  %v215_v60 = vmul.f32 %v208_v2, %v195_v34  ;;  %v216_v61 = vmul.f32 %v212_v3, %v195_v34 }
  0x88   :  { %v141_v37 = vmul.f32 %v128_v8, %v123_v39  ;;  %v142_v62 = vmul.f32 %v132_v9, %v123_v39  ;;  %v143_v38 = vmul.f32 %v136_v10, %v123_v39  ;;  %v144_v33 = vmul.f32 %v140_v11, %v123_v39 }
  0x89   :  { %v217_v30 = vadd.f32 %v213_v56, %v189_v41  ;;  %v218_v29 = vadd.f32 %v214_v59, %v190_v43  ;;  %v219_v32 = vadd.f32 %v215_v60, %v191_v44  ;;  %v220_v63 = vadd.f32 %v216_v61, %v192_v36 }
  0x8a   :  { %v145_v31 = vadd.f32 %v141_v37, %v117_v40  ;;  %v146_v28 = vadd.f32 %v142_v62, %v118_v53  ;;  %v147_v27 = vadd.f32 %v143_v38, %v119_v54  ;;  %v148_v1 = vadd.f32 %v144_v33, %v120_v55 }
  0x8b   :  { %v1388_v2 = vadd.f32 %v224_v4, %v217_v30  ;;  %v1393_v3 = vadd.f32 %v232_v5, %v219_v32  ;;  %v27_v8 = vpop.permute.xlu1 %26  ;;  %v372_v9 = vrot.slane %v1254_v7, %v1275_v16  ;;  %v380_v10 = vrot.slane %v1267_v12, %v1275_v16  ;;  %v51_v30 = vpop.permute.xlu0 %50 }
  0x8c   :  { %v165_v11 = vadd.f32 %v152_v13, %v145_v31  ;;  %v166_v4 = vadd.f32 %v156_v14, %v146_v28  ;;  %v376_v5 = vrot.slane %v1225_v58, %v1275_v16  ;;  %v167_v32 = vadd.f32 %v160_v15, %v147_v27 }
  0x8d   :  { %v168_v33 = vadd.f32 %v164_v17, %v148_v1  ;;  %v45_v13 = vmul.f32 %v32_v18, %v27_v8  ;;  %v46_v14 = vmul.f32 %v36_v19, %v27_v8  ;;  %v401_v28 = vrot.slane %v1388_v2, 4 }
  0x8e   :  { %v403_v31 = vrot.slane %v1393_v3, 4  ;;  %v238_v34 = vadd.f32 %v228_v42, %v218_v29  ;;  %v240_v36 = vadd.f32 %v236_v35, %v220_v63  ;;  %v47_v52 = vmul.f32 %v40_v20, %v27_v8 }
  0x8f   :  { %v48_v15 = vmul.f32 %v44_v21, %v27_v8  ;;  %v69_v17 = vmul.f32 %v56_v22, %v51_v30  ;;  %v70_v18 = vmul.f32 %v60_v23, %v51_v30  ;;  %v389_v19 = vrot.slane %v165_v11, 6 }
  0x90   :  { %v390_v27 = vrot.slane %v166_v4, 6  ;;  %v71_v29 = vmul.f32 %v64_v25, %v51_v30  ;;  %v72_v20 = vmul.f32 %v68_v26, %v51_v30  ;;  %v243_v35 = vpop.permute.xlu1 %242  ;;  %v391_v21 = vrot.slane %v167_v32, 6  ;;  %v315_v43 = vpop.permute.xlu0 %314 }
  0x91   :  { %v392_v39 = vrot.slane %v168_v33, 6  ;;  %v73_v40 = vadd.f32 %v69_v17, %v45_v13  ;;  %v74_v41 = vadd.f32 %v70_v18, %v46_v14  ;;  %v402_v44 = vrot.slane %v238_v34, 4 }
  0x92   :  { %v75_v22 = vadd.f32 %v71_v29, %v47_v52  ;;  %v76_v42 = vadd.f32 %v72_v20, %v48_v15  ;;  %v404_v23 = vrot.slane %v240_v36, 4  ;;  %v1557_v53 = vrot.slane %v1220_v57, %v1203_v50 }
  0x93   :  { %v1558_v25 = vrot.slane %v1254_v7, %v1203_v50  ;;  %v1559_v26 = vrot.slane %v1184_v45, %v1275_v16  ;;  %v1560_v59 = vrot.slane %v1191_v47, %v1275_v16  ;;  %v1561_v61 = vrot.slane %v1225_v58, %v1203_v50 }
  0x94   :  { %v93_v54 = vadd.f32 %v1557_v53, %v73_v40  ;;  %v1562_v62 = vrot.slane %v1267_v12, %v1203_v50  ;;  %v1563_v63 = vrot.slane %v1196_v48, %v1275_v16  ;;  %v1564_v2 = vrot.slane %v1201_v49, %v1275_v16 }
  0x95   :  { %v94_v55 = vadd.f32 %v1558_v25, %v74_v41  ;;  %v261_v56 = vmul.f32 %v1559_v26, %v243_v35  ;;  %v262_v60 = vmul.f32 %v1560_v59, %v243_v35  ;;  %v95_v37 = vadd.f32 %v1561_v61, %v75_v22  ;;  %v267_v8 = vpop.permute.xlu1 %266 }
  0x96   :  { %v96_v38 = vadd.f32 %v1562_v62, %v76_v42  ;;  %v263_v1 = vmul.f32 %v1563_v63, %v243_v35  ;;  %v264_v3 = vmul.f32 %v1564_v2, %v243_v35  ;;  %v1565_v11 = vrot.slane %v1220_v57, %v1241_v0 }
  0x97   :  { %v1566_v30 = vrot.slane %v1254_v7, %v1241_v0  ;;  %v423_v50 = vsel %vm421_vm0, %v94_v55, %v390_v27  ;;  %v422_v33 = vsel %vm421_vm0, %v93_v54, %v389_v19  ;;  %v1567_v13 = vrot.slane %v1184_v45, %v1291_v24 }
  0x98   :  { %v333_v4 = vmul.f32 %v1565_v11, %v315_v43  ;;  %v1568_v34 = vrot.slane %v1191_v47, %v1291_v24  ;;  %v1569_v52 = vrot.slane %v1196_v48, %v1291_v24  ;;  %v1570_v17 = vrot.slane %v1201_v49, %v1291_v24 }
  0x99   :  { %v334_v32 = vmul.f32 %v1566_v30, %v315_v43  ;;  %v285_v14 = vmul.f32 %v1567_v13, %v267_v8  ;;  %v1571_v27 = vrot.slane %v1225_v58, %v1241_v0  ;;  %v1572_v45 = vrot.slane %v1267_v12, %v1241_v0 }
  0x9a   :  { %v286_v36 = vmul.f32 %v1568_v34, %v267_v8  ;;  %v287_v15 = vmul.f32 %v1569_v52, %v267_v8  ;;  %v288_v18 = vmul.f32 %v1570_v17, %v267_v8  ;;  %v425_v20 = vsel %vm421_vm0, %v96_v38, %v392_v39  ;;  %v339_v54 = vpop.permute.xlu1 %338 }
  0x9b   :  { %v335_v19 = vmul.f32 %v1571_v27, %v315_v43  ;;  %v336_v29 = vmul.f32 %v1572_v45, %v315_v43  ;;  %v424_v47 = vsel %vm421_vm0, %v95_v37, %v391_v21  ;;  %v289_v35 = vadd.f32 %v285_v14, %v261_v56 }
  0x9c   :  { %v290_v40 = vadd.f32 %v286_v36, %v262_v60  ;;  %v291_v48 = vadd.f32 %v287_v15, %v263_v1  ;;  %v292_v41 = vadd.f32 %v288_v18, %v264_v3  ;;  %v428_v22 = vsel %vm426_vm1, %v423_v50, %v402_v44 }
  0x9d   :  { %v430_v49 = vsel %vm426_vm1, %v425_v20, %v404_v23  ;;  %v427_v42 = vsel %vm426_vm1, %v422_v33, %v401_v28  ;;  %v429_v53 = vsel %vm426_vm1, %v424_v47, %v403_v31  ;;  %v1573_v0 = vrot.slane %v1220_v57, %v1205_v51 }
  0x9e   :  { %v1574_v39 = vrot.slane %v1225_v58, %v1205_v51  ;;  %v1575_v25 = vrot.slane %v1254_v7, %v1205_v51  ;;  %v1576_v44 = vrot.slane %v1267_v12, %v1205_v51  ;;  %v1577_v28 = vrot.slane %v1220_v57, %v1249_v6 }
  0x9f   :  { %v309_v43 = vadd.f32 %v1573_v0, %v289_v35  ;;  %v1578_v26 = vrot.slane %v1254_v7, %v1249_v6  ;;  %v1579_v59 = vrot.slane %v1225_v58, %v1249_v6  ;;  %v1580_v61 = vrot.slane %v1267_v12, %v1249_v6 }
  0xa0   :  { %v311_v21 = vadd.f32 %v1574_v39, %v291_v48  ;;  %v310_v55 = vadd.f32 %v1575_v25, %v290_v40  ;;  %v312_v23 = vadd.f32 %v1576_v44, %v292_v41  ;;  %v357_v31 = vmul.f32 %v1577_v28, %v339_v54 }
  0xa1   :  { %v358_v56 = vmul.f32 %v1578_v26, %v339_v54  ;;  %v359_v60 = vmul.f32 %v1579_v59, %v339_v54  ;;  %v360_v37 = vmul.f32 %v1580_v61, %v339_v54  ;;  %v413_v51 = vrot.slane %v309_v43, 2 }
  0xa2   :  { %v414_v62 = vrot.slane %v310_v55, 2  ;;  %v416_v38 = vrot.slane %v312_v23, 2  ;;  %v415_v63 = vrot.slane %v311_v21, 2  ;;  %v361_v1 = vadd.f32 %v357_v31, %v333_v4 }
  0xa3   :  { %v362_v2 = vadd.f32 %v358_v56, %v334_v32  ;;  %v363_v3 = vadd.f32 %v359_v60, %v335_v19  ;;  %v364_v8 = vadd.f32 %v360_v37, %v336_v29  ;;  %v432_v50 = vsel %vm431_vm2, %v427_v42, %v413_v51 }
  0xa4   :  { %v433_v11 = vsel %vm431_vm2, %v428_v22, %v414_v62  ;;  %v435_v30 = vsel %vm431_vm2, %v430_v49, %v416_v38  ;;  %v434_v33 = vsel %vm431_vm2, %v429_v53, %v415_v63  ;;  %v436_v6 = vadd.f32 3.0, %v432_v50 }
  0xa5   :  { %v437_v13 = vadd.f32 3.0, %v433_v11  ;;  %v439_v14 = vadd.f32 3.0, %v435_v30  ;;  %v438_v34 = vadd.f32 3.0, %v434_v33  ;;  %v382_v36 = vadd.f32 %v372_v9, %v362_v2 }
  0xa6   :  { %v384_v4 = vadd.f32 %v380_v10, %v364_v8  ;;  %v381_v32 = vadd.f32 %v368_v46, %v361_v1  ;;  %v383_v52 = vadd.f32 %v376_v5, %v363_v3  ;;  %v444_v18 = vmax.f32 %v436_v6, 0.0 }
  0xa7   :  { %v445_v15 = vmax.f32 %v437_v13, 0.0  ;;  %v447_v17 = vmax.f32 %v439_v14, 0.0  ;;  %v446_v27 = vmax.f32 %v438_v34, 0.0  ;;  %v441_v19 = vadd.f32 3.0, %v382_v36 }
  0xa8   :  { %v443_v45 = vadd.f32 3.0, %v384_v4  ;;  %v440_v7 = vadd.f32 3.0, %v381_v32  ;;  %v442_v9 = vadd.f32 3.0, %v383_v52  ;;  %v452_v12 = vmin.f32 %v444_v18, 6.0 }
  0xa9   :  { %v453_v29 = vmin.f32 %v445_v15, 6.0  ;;  %v455_v20 = vmin.f32 %v447_v17, 6.0  ;;  %v454_v10 = vmin.f32 %v446_v27, 6.0  ;;  %v449_v47 = vmax.f32 %v441_v19, 0.0 }
  0xaa   :  { %v451_v35 = vmax.f32 %v443_v45, 0.0  ;;  %v448_v40 = vmax.f32 %v440_v7, 0.0  ;;  %v450_v46 = vmax.f32 %v442_v9, 0.0  ;;  %v460_v58 = vmul.f32 %v452_v12, %v432_v50 }
  0xab   :  { %v461_v48 = vmul.f32 %v453_v29, %v433_v11  ;;  %v463_v41 = vmul.f32 %v455_v20, %v435_v30  ;;  %v462_v16 = vmul.f32 %v454_v10, %v434_v33  ;;  %v457_v5 = vmin.f32 %v449_v47, 6.0 }
  0xac   :  { %v459_v22 = vmin.f32 %v451_v35, 6.0  ;;  %v456_v49 = vmin.f32 %v448_v40, 6.0  ;;  %v458_v42 = vmin.f32 %v450_v46, 6.0  ;;  %v468_v43 = vmul.f32 0.16666667, %v460_v58 }
  0xad   :  { %v469_v53 = vmul.f32 0.16666667, %v461_v48  ;;  %v471_v0 = vmul.f32 0.16666667, %v463_v41  ;;  %v470_v39 = vmul.f32 0.16666667, %v462_v16  ;;  %v465_v21 = vmul.f32 %v457_v5, %v382_v36 }
  0xae   :  { %v467_v54 = vmul.f32 %v459_v22, %v384_v4  ;;  %v464_v25 = vmul.f32 %v456_v49, %v381_v32  ;;  %v466_v55 = vmul.f32 %v458_v42, %v383_v52  ;;  %v543_v59 = vrot.slane %v1220_v57, %v1291_v24 }
  0xaf   :  { %608 = vmatprep.mubr.f32.mxu0 %v469_v53  ;;  %683 = vmatprep.mubr.f32.mxu1 %v471_v0  ;;  %v473_v44 = vmul.f32 0.16666667, %v465_v21 }
  0xb0   :  { %609 = vmatmul.mubr.f32.vlgmr.msra.gmra.mrb[0].mxu0 %v468_v43  ;;  %684 = vmatmul.mubr.f32.vlgmr.msra.gmra.mrb[0].mxu1 %v470_v39  ;;  %v475_v23 = vmul.f32 0.16666667, %v467_v54  ;;  %v472_v28 = vmul.f32 0.16666667, %v464_v25  ;;  %v474_v31 = vmul.f32 0.16666667, %v466_v55 }
  0xb1   :  { %613 = vmatprep.mubr.f32.mxu0 %v473_v44 }
  0xb2   :  { %688 = vmatprep.mubr.f32.mxu1 %v475_v23 }
  0xb4   :  { %614 = vmatmul.mubr.f32.gmra.mrb[2].mxu0 %v472_v28  ;;  %689 = vmatmul.mubr.f32.gmra.mrb[2].mxu1 %v474_v31 }
 0x183   :  { %v775_v26 = vpop.f32.mrb[0].mxu0  ;;  %v813_v56 = vpop.f32.mrb[0].mxu1 }
 0x184   :  { %v776_v60 = vpop.f32.mrb[1].mxu0  ;;  %v814_v61 = vpop.f32.mrb[1].mxu1 }
 0x185   :  { %v777_v37 = vadd.f32 %v776_v60, %v775_v26  ;;  %v815_v62 = vadd.f32 %v814_v61, %v813_v56 }
 0x187   :  { %v611_v38 = vadd.f32 %v777_v37, %v543_v59  ;;  %v778_v51 = vpop.f32.mrb[2].mxu0  ;;  %v816_v63 = vpop.f32.mrb[2].mxu1 }
 0x188   :  { %v779_v1 = vpop.f32.mrb[3].mxu0  ;;  %v817_v2 = vpop.f32.mrb[3].mxu1 }
 0x189   :  { %v686_v3 = vadd.f32 %v815_v62, %v611_v38  ;;  %v780_v8 = vadd.f32 %v779_v1, %v778_v51  ;;  %v818_v11 = vadd.f32 %v817_v2, %v816_v63 }
 0x18b   :  { %v694_v30 = vmul.f32 4.0, %v686_v3  ;;  %v616_v50 = vadd.f32 %v780_v8, %v543_v59 }
 0x18d   :  { %v883_v33 = vround.rtne.f32 %v694_v30  ;;  %v691_v13 = vadd.f32 %v818_v11, %v616_v50 }
 0x18f   :  { %v696_v14 = vmul.f32 0.25, %v883_v33  ;;  %v717_v6 = vmul.f32 4.0, %v691_v13 }
 0x191   :  { %v697_v34 = vmax.f32 %v696_v14, -32.0  ;;  %v884_v57 = vround.rtne.f32 %v717_v6 }
 0x193   :  { %v698_v24 = vmin.f32 %v697_v34, 31.75  ;;  %v719_v36 = vmul.f32 0.25, %v884_v57 }
 0x195   :  { %707 = vrot.lane.b32.xlu0 %v698_v24, %s947_s1  ;;  %702 = vrot.lane.b32.xlu1 %v698_v24, %s948_s16  ;;  %v720_v4 = vmax.f32 %v719_v36, -32.0  ;;  %700 = vst.msk [vmem:[#allocation2] sm:$0x3] %vm699_vm3, %v698_v24 }
 0x197   :  { %v721_v32 = vmin.f32 %v720_v4, 31.75 }
 0x199   :  { %712 = vrot.lane.b32.xlu1 %v698_v24, %s949_s17  ;;  %723 = vrot.lane.b32.xlu0 %v721_v32, %s950_s18 }
 0x207   :  { %v703_v52 = vpop.permute.xlu1 %702  ;;  %v708_v15 = vpop.permute.xlu0 %707 }
 0x208   :  { %706 = vst.msk [vmem:[#allocation2] sm:$0xc] %vm705_vm4, %v703_v52 }
 0x209   :  { %711 = vst.msk [vmem:[#allocation2] sm:$0x30] %vm710_vm5, %v708_v15 }
 0x20b   :  { %v713_v17 = vpop.permute.xlu1 %712  ;;  %v724_v18 = vpop.permute.xlu0 %723 }
 0x20c   :  { %716 = vst.msk [vmem:[#allocation2] sm:$0xc0] %vm715_vm6, %v713_v17 }
 0x20d   :  { %726 = vst.msk [vmem:[#allocation2 + $0x8] sm:$0x3] %vm699_vm3, %v724_v18 }
 0x20e   :  { %924 = shalt.err (!%p921_p4)
}
 0x20f   :  { %s925_s24 = scalar_lea.hbm %s1556_s3, 256 }
 0x210   :  { %p926_p5 = scmp.ne.s32.totalorder %s1556_s3, %s925_s24  ;;  %p929_p6 = scmp.lt.u32.totalorder %s925_s24, %s1556_s3 }
 0x212   :  { %p931_p7 = pnand %p929_p6, %p926_p5 }
 0x214   :  { %934 = shalt.err (!%p931_p7)
}
 0x215   :  { %s952_s29 = smov 128   ;;  %s953_s30 = smov 8  }
 0x216   :  { %738 = dma.vmem_to_hbm [thread:$0]  %s733_s20, 256, %s1556_s3, [#allocation3], %s952_s29, %s952_s29, %s953_s30  }
 0x217   :  { %935 = dma.done.wait [#allocation3], 256  }
 0x218   :  { %936 = vsyncadd [#allocation3], 4294967040 }
 0x219   :  { %742 = vsyncpa [#allocation3], 1 }

</bundles_post_ra>
